<compile_context>
chip_gen: v7x
topology: tpu7x:2x2x1
jax: 0.10.0
libtpu: 0.0.40
codegen_flags: <defaults>
</compile_context>

<pallas_src>
import jax
import jax.numpy as jnp
from jax.experimental import pallas as pl
from jax.experimental.pallas import tpu as pltpu


def _round_up(x: int, m: int) -> int:
    return ((x + m - 1) // m) * m


def _patch_embed_kernel(x_ref, w_ref, b_ref, o_ref, acc_ref):
    """One (tm, tn) output tile; the K reduction runs along grid axis 2.

    x_ref:   (tm, tk) flattened patches (compute dtype)
    w_ref:   (tn, tk) projection weight, PyTorch (E, K) orientation
    b_ref:   (1, tn)  bias (float32)
    o_ref:   (tm, tn) output tile
    acc_ref: (tm, tn) float32 accumulator (VMEM scratch, resident across K)
    """
    k = pl.program_id(2)

    @pl.when(k == 0)
    def _init():
        acc_ref[...] = jnp.zeros_like(acc_ref)

    # A @ B.T on the MXU (contract the last dim of both operands), f32 accumulate.
    acc_ref[...] += jax.lax.dot_general(
        x_ref[...],
        w_ref[...],
        dimension_numbers=(((1,), (1,)), ((), ())),
        preferred_element_type=jnp.float32,
    )

    @pl.when(k == pl.num_programs(2) - 1)
    def _finalize():
        o_ref[...] = (acc_ref[...] + b_ref[...].astype(jnp.float32)).astype(o_ref.dtype)


def patch_embedding(x, weight, bias, patch_size, *, compute_dtype=None,
                    tm=512, tn=512, tk=512):
    """x: (B, C, H, W) NCHW. weight: (E, C, P, P) (PyTorch Conv2d layout). bias: (E,).
    Returns (B, N, E) with N = (H//P)*(W//P) — matches Conv2d + Flatten(2) + Transpose(1,2)."""
    B, C, H, W = x.shape
    E = weight.shape[0]
    P = patch_size
    assert H % P == 0 and W % P == 0
    nh, nw = H // P, W // P
    N = nh * nw
    K = C * P * P
    M = B * N

    out_dtype = x.dtype
    if compute_dtype is None:
        compute_dtype = x.dtype

    # --- glue: extract non-overlapping patches, flattened per-patch in (c, i, j)
    #     order so the reduction matches PyTorch Conv2d's weight layout. ---
    # TODO(synk): fuse this patch-extraction transpose into the kernel
    # (memory_space=pl.ANY + strided make_async_copy) to avoid one extra HBM
    # pass over the activations.
    patches = x.reshape(B, C, nh, P, nw, P)
    patches = patches.transpose(0, 2, 4, 1, 3, 5).reshape(M, K)

    w_mat = weight.reshape(E, K)  # keep (E, K): no wrapper-side transpose

    # --- pad to lane/sublane-friendly, tile-divisible shapes ---
    tm = min(tm, _round_up(M, 8))
    tn = min(tn, _round_up(E, 128))   # lane-dense (>=128) output stores
    tk = min(tk, _round_up(K, 128))
    Mp, Ep, Kp = _round_up(M, tm), _round_up(E, tn), _round_up(K, tk)

    patches = jnp.pad(patches, ((0, Mp - M), (0, Kp - K))).astype(compute_dtype)
    w_mat = jnp.pad(w_mat, ((0, Ep - E), (0, Kp - K))).astype(compute_dtype)
    b_mat = jnp.pad(bias.astype(jnp.float32), (0, Ep - E)).reshape(1, Ep)

    grid = (Mp // tm, Ep // tn, Kp // tk)

    in_itemsize = jnp.dtype(compute_dtype).itemsize
    out_itemsize = jnp.dtype(out_dtype).itemsize
    cost = pl.CostEstimate(
        flops=2 * M * K * E,
        transcendentals=0,
        bytes_accessed=((Mp * Kp + Ep * Kp) * in_itemsize
                        + Mp * Ep * out_itemsize + Ep * 4),
    )

    out = pl.pallas_call(
        _patch_embed_kernel,
        out_shape=jax.ShapeDtypeStruct((Mp, Ep), out_dtype),
        grid_spec=pltpu.PrefetchScalarGridSpec(
            num_scalar_prefetch=0,
            grid=grid,
            in_specs=[
                pl.BlockSpec((tm, tk), lambda i, j, k: (i, k)),   # patches
                pl.BlockSpec((tn, tk), lambda i, j, k: (j, k)),   # weight (E, K)
                pl.BlockSpec((1, tn), lambda i, j, k: (0, j)),    # bias
            ],
            out_specs=pl.BlockSpec((tm, tn), lambda i, j, k: (i, j)),
            scratch_shapes=[pltpu.VMEM((tm, tn), jnp.float32)],
        ),
        compiler_params=pltpu.CompilerParams(
            dimension_semantics=("parallel", "parallel", "arbitrary"),
        ),
        cost_estimate=cost,
    )(patches, w_mat, b_mat)

    return out[:M, :E].reshape(B, N, E)


if __name__ == "__main__":
    # Small shapes consistent with the module: B=2, C=4, H=W=16, patch=4, E=32
    B, C, H, W = 2, 4, 16, 16
    patch_size = 4
    embedding_dim = 32

    key = jax.random.PRNGKey(0)
    kx, kw, kb = jax.random.split(key, 3)

    x = jax.random.normal(kx, (B, C, H, W), dtype=jnp.float32)
    weight = jax.random.normal(
        kw, (embedding_dim, C, patch_size, patch_size), dtype=jnp.float32
    ) * 0.02
    bias = jax.random.normal(kb, (embedding_dim,), dtype=jnp.float32) * 0.02

    N = (H // patch_size) * (W // patch_size)

    # XLA conv reference (same semantics as the nn.Module).
    ref = jax.lax.conv_general_dilated(
        x, weight,
        window_strides=(patch_size, patch_size),
        padding="VALID",
        dimension_numbers=("NCHW", "OIHW", "NCHW"),
    ) + bias[None, :, None, None]
    ref = ref.reshape(B, embedding_dim, -1).transpose(0, 2, 1)  # (B, N, E)

    # float32 path — strict check.
    y = patch_embedding(x, weight, bias, patch_size)
    y = jax.block_until_ready(y)
    assert y.shape == (B, N, embedding_dim)
    assert jnp.allclose(y, ref, atol=1e-4, rtol=1e-4)

    # bfloat16 MXU path (f32 accumulate) — looser tolerance.
    y_bf16 = patch_embedding(x, weight, bias, patch_size, compute_dtype=jnp.bfloat16)
    y_bf16 = jax.block_until_ready(y_bf16)
    assert y_bf16.shape == (B, N, embedding_dim)
    assert jnp.allclose(y_bf16.astype(jnp.float32), ref, atol=5e-2, rtol=5e-2)

    print("KERNEL_OK")
</pallas_src>

<mosaic_0001>
module attributes {stable_mosaic.version = 11 : i64} {
  func.func @_patch_embed_kernel(%arg0: i32, %arg1: i32, %arg2: i32, %arg3: memref<32x128xf32, #tpu.memory_space<vmem>>, %arg4: memref<128x128xf32, #tpu.memory_space<vmem>>, %arg5: memref<1x128xf32, #tpu.memory_space<vmem>>, %arg6: memref<32x128xf32, #tpu.memory_space<vmem>>, %arg7: memref<32x128xf32, #tpu.memory_space<vmem>>) attributes {dimension_semantics = [#tpu.dimension_semantics<parallel>, #tpu.dimension_semantics<parallel>, #tpu.dimension_semantics<arbitrary>], iteration_bounds = array<i64: 1, 1, 1>, scalar_prefetch = 0 : i64, scratch_operands = 1 : i64, tpu.core_type = #tpu.core_type<tc>, window_params = [{transform_indices = @transform_0, window_bounds = array<i64: 32, 128>}, {transform_indices = @transform_1, window_bounds = array<i64: 128, 128>}, {transform_indices = @transform_2, window_bounds = array<i64: 1, 128>}, {transform_indices = @transform_3, window_bounds = array<i64: 32, 128>}]} {
    %c0_i32 = arith.constant 0 : i32
    %0 = arith.cmpi eq, %arg2, %c0_i32 : i32
    %1 = arith.extui %0 : i1 to i32
    %c0_i32_0 = arith.constant 0 : i32
    %2 = arith.cmpi ne, %1, %c0_i32_0 : i32
    scf.if %2 {
      %cst_10 = arith.constant 0.000000e+00 : f32
      %12 = vector.broadcast %cst_10 : f32 to vector<32x128xf32>
      %c0_11 = arith.constant 0 : index
      %c0_12 = arith.constant 0 : index
      %13 = vector.load %arg7[%c0_11, %c0_12] : memref<32x128xf32, #tpu.memory_space<vmem>>, vector<32x128xf32>
      tpu.vector_store %arg7[%c0_11, %c0_12], %12 {strides = array<i32>} : memref<32x128xf32, #tpu.memory_space<vmem>>, vector<32x128xf32>,
    } else {
    }
    %c0 = arith.constant 0 : index
    %c0_1 = arith.constant 0 : index
    %3 = vector.load %arg7[%c0, %c0_1] : memref<32x128xf32, #tpu.memory_space<vmem>>, vector<32x128xf32>
    %c0_2 = arith.constant 0 : index
    %c0_3 = arith.constant 0 : index
    %4 = vector.load %arg3[%c0_2, %c0_3] : memref<32x128xf32, #tpu.memory_space<vmem>>, vector<32x128xf32>
    %c0_4 = arith.constant 0 : index
    %c0_5 = arith.constant 0 : index
    %5 = vector.load %arg4[%c0_4, %c0_5] : memref<128x128xf32, #tpu.memory_space<vmem>>, vector<128x128xf32>
    %cst = arith.constant dense<0.000000e+00> : vector<32x128xf32>
    %6 = tpu.matmul %4, %5, %cst {dimension_numbers = #tpu.dot_dimension_numbers<[1], [1], [0], [0], [0, 0, 1, 0], [], []>} : vector<32x128xf32>, vector<128x128xf32>, vector<32x128xf32> -> vector<32x128xf32>
    %7 = arith.addf %3, %6 : vector<32x128xf32>
    %c0_6 = arith.constant 0 : index
    %c0_7 = arith.constant 0 : index
    %8 = vector.load %arg7[%c0_6, %c0_7] : memref<32x128xf32, #tpu.memory_space<vmem>>, vector<32x128xf32>
    tpu.vector_store %arg7[%c0_6, %c0_7], %7 {strides = array<i32>} : memref<32x128xf32, #tpu.memory_space<vmem>>, vector<32x128xf32>,
    %c0_i32_8 = arith.constant 0 : i32
    %9 = arith.cmpi eq, %arg2, %c0_i32_8 : i32
    %10 = arith.extui %9 : i1 to i32
    %c0_i32_9 = arith.constant 0 : i32
    %11 = arith.cmpi ne, %10, %c0_i32_9 : i32
    scf.if %11 {
      %c0_10 = arith.constant 0 : index
      %c0_11 = arith.constant 0 : index
      %12 = vector.load %arg7[%c0_10, %c0_11] : memref<32x128xf32, #tpu.memory_space<vmem>>, vector<32x128xf32>
      %c0_12 = arith.constant 0 : index
      %c0_13 = arith.constant 0 : index
      %13 = vector.load %arg5[%c0_12, %c0_13] : memref<1x128xf32, #tpu.memory_space<vmem>>, vector<1x128xf32>
      %14 = vector.broadcast %13 : vector<1x128xf32> to vector<32x128xf32>
      %15 = arith.addf %12, %14 : vector<32x128xf32>
      %c0_14 = arith.constant 0 : index
      %c0_15 = arith.constant 0 : index
      %16 = vector.load %arg6[%c0_14, %c0_15] : memref<32x128xf32, #tpu.memory_space<vmem>>, vector<32x128xf32>
      tpu.vector_store %arg6[%c0_14, %c0_15], %15 {strides = array<i32>} : memref<32x128xf32, #tpu.memory_space<vmem>>, vector<32x128xf32>,
    } else {
    }
    return
  }
  func.func @transform_0(%arg0: i32, %arg1: i32, %arg2: i32) -> (i32, i32) {
    %c0_i32 = arith.constant 0 : i32
    return %arg0, %arg2 : i32, i32
  }
  func.func @transform_1(%arg0: i32, %arg1: i32, %arg2: i32) -> (i32, i32) {
    %c0_i32 = arith.constant 0 : i32
    return %arg1, %arg2 : i32, i32
  }
  func.func @transform_2(%arg0: i32, %arg1: i32, %arg2: i32) -> (i32, i32) {
    %c0_i32 = arith.constant 0 : i32
    %c0_i32_0 = arith.constant 0 : i32
    return %c0_i32, %arg1 : i32, i32
  }
  func.func @transform_3(%arg0: i32, %arg1: i32, %arg2: i32) -> (i32, i32) {
    %c0_i32 = arith.constant 0 : i32
    return %arg0, %arg1 : i32, i32
  }
}

</mosaic_0001>

<bundles_post_ra>
// kernel: tpu_custom_call.1
= control target key start
LH: loop header
LB: loop body
LE: loop exit
PB: predicated region body
PF: predicated region fallthrough
CT: control target
= control target key end

     0   :  { %8 = vsyncpa [#allocation4], 0  ;;  %s465_s0 = inlined_call_operand.hbm [shape: f32[32,128], index: 0, kind: input, shape index: {}]   ;;  %s466_s1 = inlined_call_operand.hbm [shape: f32[128,128], index: 1, kind: input, shape index: {}]   ;;  %s467_s2 = inlined_call_operand.vmem [shape: f32[1,128], index: 2, kind: input, shape index: {}]   ;;  %s468_s3 = inlined_call_operand.hbm [shape: f32[32,128], index: 3, kind: output, shape index: {}]  }
   0x1   :  { %9 = vsyncpa [#allocation7], 0 }
   0x2   :  { %10 = vsyncpa [#allocation5], 0  ;;  %s392_s12 = smov [#allocation3]   ;;  %s320_s16 = scalar_lea.hbm %s465_s0, 512 }
   0x3   :  { %s16_s13 = sshll.u32 %s392_s12, 4  ;;  %p321_p0 = scmp.ne.s32.totalorder %s465_s0, %s320_s16  ;;  %s17_s13 = int_to_ptr.vmem [resolvable:$true] %s16_s13 }
   0x4   :  { %p324_p1 = scmp.lt.u32.totalorder %s320_s16, %s465_s0 }
   0x6   :  { %p326_p2 = pnand %p324_p1, %p321_p0 }
   0x8   :  { %329 = shalt.err (!%p326_p2)
}
   0x9   :  { %s330_s21 = scalar_lea.vmem %s17_s13, 512  ;;  %p335_p4 = scmp.lt.s32.totalorder %s17_s13, %s17_s13 }
   0xa   :  { %p331_p3 = scmp.ne.s32.totalorder %s17_s13, %s330_s21  ;;  %p336_p5 = scmp.lt.s32.totalorder %s330_s21, %s330_s21 }
   0xc   :  { %p337_p6 = por %p336_p5, %p335_p4 }
   0xe   :  { %p338_p7 = pnand %p337_p6, %p331_p3 }
  0x10   :  { %341 = shalt.err (!%p338_p7)
}
  0x11   :  { %s393_s22 = smov 128   ;;  %s394_s23 = smov 8  }
  0x12   :  { %22 = dma.hbm_to_vmem [thread:$0]  %s465_s0, 512, %s17_s13, [#allocation4], %s393_s22, %s393_s22, %s394_s23  }
  0x13   :  { %s395_s26 = smov [#allocation6]   ;;  %s342_s30 = scalar_lea.hbm %s466_s1, 2048 }
  0x14   :  { %s28_s27 = sshll.u32 %s395_s26, 4  ;;  %p343_p8 = scmp.ne.s32.totalorder %s466_s1, %s342_s30  ;;  %s29_s27 = int_to_ptr.vmem [resolvable:$true] %s28_s27 }
  0x15   :  { %p346_p9 = scmp.lt.u32.totalorder %s342_s30, %s466_s1 }
  0x17   :  { %p348_p10 = pnand %p346_p9, %p343_p8 }
  0x19   :  { %351 = shalt.err (!%p348_p10)
}
  0x1a   :  { %s352_s8 = scalar_lea.vmem %s29_s27, 2048  ;;  %p357_p12 = scmp.lt.s32.totalorder %s29_s27, %s29_s27 }
  0x1b   :  { %p353_p11 = scmp.ne.s32.totalorder %s29_s27, %s352_s8  ;;  %p358_p13 = scmp.lt.s32.totalorder %s352_s8, %s352_s8 }
  0x1d   :  { %p359_p0 = por %p358_p13, %p357_p12 }
  0x1f   :  { %p360_p1 = pnand %p359_p0, %p353_p11 }
  0x21   :  { %363 = shalt.err (!%p360_p1)
}
  0x22   :  { %34 = dma.hbm_to_vmem [thread:$0]  %s466_s1, 2048, %s29_s27, [#allocation7], %s393_s22, %s393_s22, %s394_s23  }
  0x23   :  { %386 = dma.done.wait [#allocation4], 512  }
  0x24   :  { %387 = vsyncadd [#allocation4], 4294966784 }
  0x25   :  { %388 = dma.done.wait [#allocation7], 2048  }
  0x26   :  { %389 = vsyncadd [#allocation7], 4294965248  ;;  %v59_v0 = vld [vmem:[#allocation6] sm:$0xff]  ;;  %v60_v1 = vld [vmem:[#allocation6 + $0x8] sm:$0xff]  ;;  %s396_s11 = smov [#allocation8]  }
  0x27   :  { %v61_v2 = vld [vmem:[#allocation6 + $0x10] sm:$0xff]  ;;  %v267_v3 = vpack.c.bf16 %v60_v1, %v59_v0  ;;  %v62_v4 = vld [vmem:[#allocation6 + $0x18] sm:$0xff]  ;;  %v55_v6 = vld [vmem:[#allocation3] sm:$0xff]  ;;  %s195_s12 = sshll.u32 %s396_s11, 4  ;;  %s196_s12 = int_to_ptr.vmem [resolvable:$true] %s195_s12 }
  0x28   :  { %v271_v5 = vpack.c.bf16 %v62_v4, %v61_v2  ;;  %v57_v7 = vld [vmem:[#allocation3 + $0x10] sm:$0xff]  ;;  %v63_v8 = vld [vmem:[#allocation6 + $0x20] sm:$0xff]  ;;  %v64_v9 = vld [vmem:[#allocation6 + $0x28] sm:$0xff]  ;;  %261 = vmatprep.mubr.f32.mxu0 %v55_v6  ;;  %s364_s13 = scalar_lea.vmem %s196_s12, 512  ;;  %p369_p3 = scmp.lt.s32.totalorder %s196_s12, %s196_s12 }
  0x29   :  { %268 = vmatprep.subr.bf16.mxu0 %v267_v3  ;;  %299 = vmatprep.subr.bf16.mxu1 %v267_v3  ;;  %v275_v10 = vpack.c.bf16 %v64_v9, %v63_v8  ;;  %v65_v11 = vld [vmem:[#allocation6 + $0x30] sm:$0xff]  ;;  %v66_v12 = vld [vmem:[#allocation6 + $0x38] sm:$0xff]  ;;  %v67_v14 = vld [vmem:[#allocation6 + $0x40] sm:$0xff]  ;;  %p365_p2 = scmp.ne.s32.totalorder %s196_s12, %s364_s13  ;;  %p370_p4 = scmp.lt.s32.totalorder %s364_s13, %s364_s13 }
  0x2a   :  { %270 = vmatpush3.bf16.xpose.msra.mxu0 %v267_v3  ;;  %307 = vmatpush3.bf16.xpose.msra.mxu1 %v267_v3  ;;  %v279_v13 = vpack.c.bf16 %v66_v12, %v65_v11  ;;  %v68_v15 = vld [vmem:[#allocation6 + $0x48] sm:$0xff]  ;;  %v69_v17 = vld [vmem:[#allocation6 + $0x50] sm:$0xff]  ;;  %v70_v18 = vld [vmem:[#allocation6 + $0x58] sm:$0xff] }
  0x2b   :  { %272 = vmatprep.subr.bf16.mxu0 %v271_v5  ;;  %300 = vmatprep.subr.bf16.mxu1 %v271_v5  ;;  %v283_v16 = vpack.c.bf16 %v68_v15, %v67_v14  ;;  %v287_v19 = vpack.c.bf16 %v70_v18, %v69_v17  ;;  %v71_v20 = vld [vmem:[#allocation6 + $0x60] sm:$0xff]  ;;  %v72_v21 = vld [vmem:[#allocation6 + $0x68] sm:$0xff]  ;;  %v73_v23 = vld [vmem:[#allocation6 + $0x70] sm:$0xff]  ;;  %p371_p5 = por %p370_p4, %p369_p3 }
  0x2c   :  { %264 = vmatprep.mubr.f32.mxu1 %v57_v7  ;;  %v291_v22 = vpack.c.bf16 %v72_v21, %v71_v20  ;;  %v74_v24 = vld [vmem:[#allocation6 + $0x78] sm:$0xff]  ;;  %v56_v26 = vld [vmem:[#allocation3 + $0x8] sm:$0xff]  ;;  %v208_v28 = vld [vmem:[%s467_s2] ss:$0 sm:$0xff] }
  0x2d   :  { %v295_v25 = vpack.c.bf16 %v74_v24, %v73_v23  ;;  %v58_v27 = vld [vmem:[#allocation3 + $0x18] sm:$0xff]  ;;  %p372_p6 = pnand %p371_p5, %p365_p2 }
  0x32   :  { %274 = vmatpush3.bf16.xpose.msra.mxu0 %v271_v5  ;;  %308 = vmatpush3.bf16.xpose.msra.mxu1 %v271_v5 }
  0x33   :  { %276 = vmatprep.subr.bf16.mxu0 %v275_v10  ;;  %301 = vmatprep.subr.bf16.mxu1 %v275_v10 }
  0x3a   :  { %278 = vmatpush3.bf16.xpose.msra.mxu0 %v275_v10  ;;  %309 = vmatpush3.bf16.xpose.msra.mxu1 %v275_v10 }
  0x3b   :  { %280 = vmatprep.subr.bf16.mxu0 %v279_v13  ;;  %302 = vmatprep.subr.bf16.mxu1 %v279_v13 }
  0x42   :  { %282 = vmatpush3.bf16.xpose.msra.mxu0 %v279_v13  ;;  %310 = vmatpush3.bf16.xpose.msra.mxu1 %v279_v13 }
  0x43   :  { %284 = vmatprep.subr.bf16.mxu0 %v283_v16  ;;  %303 = vmatprep.subr.bf16.mxu1 %v283_v16 }
  0x4a   :  { %286 = vmatpush3.bf16.xpose.msra.mxu0 %v283_v16  ;;  %311 = vmatpush3.bf16.xpose.msra.mxu1 %v283_v16 }
  0x4b   :  { %288 = vmatprep.subr.bf16.mxu0 %v287_v19  ;;  %304 = vmatprep.subr.bf16.mxu1 %v287_v19 }
  0x52   :  { %290 = vmatpush3.bf16.xpose.msra.mxu0 %v287_v19  ;;  %312 = vmatpush3.bf16.xpose.msra.mxu1 %v287_v19 }
  0x53   :  { %292 = vmatprep.subr.bf16.mxu0 %v291_v22  ;;  %305 = vmatprep.subr.bf16.mxu1 %v291_v22 }
  0x5a   :  { %294 = vmatpush3.bf16.xpose.msra.mxu0 %v291_v22  ;;  %313 = vmatpush3.bf16.xpose.msra.mxu1 %v291_v22 }
  0x5b   :  { %296 = vmatprep.subr.bf16.mxu0 %v295_v25  ;;  %306 = vmatprep.subr.bf16.mxu1 %v295_v25 }
  0x62   :  { %298 = vmatpush3.bf16.xpose.msra.mxu0 %v295_v25  ;;  %314 = vmatpush3.bf16.xpose.msra.mxu1 %v295_v25 }
  0x69   :  { %262 = vmatmul.mubr.f32.vlgmr.msra.gmra.mrb[0].mxu0 %v56_v26  ;;  %265 = vmatmul.mubr.f32.vlgmr.msra.gmra.mrb[0].mxu1 %v58_v27 }
 0x13c   :  { %v263_v29 = vpop.f32.mrb[0].mxu0  ;;  %v266_v30 = vpop.f32.mrb[0].mxu1 }
 0x13d   :  { %v183_v31 = vadd.f32 %v263_v29, %v208_v28  ;;  %v185_v32 = vadd.f32 %v266_v30, %v208_v28  ;;  %v141_v33 = vpop.f32.mrb[1].mxu0  ;;  %v151_v34 = vpop.f32.mrb[1].mxu1 }
 0x13e   :  { %v182_v35 = vadd.f32 %v208_v28, %v141_v33  ;;  %v184_v36 = vadd.f32 %v208_v28, %v151_v34 }
 0x13f   :  { %187 = vst [vmem:[#allocation8 + $0x8] sm:$0xff] %v183_v31  ;;  %189 = vst [vmem:[#allocation8 + $0x18] sm:$0xff] %v185_v32 }
 0x140   :  { %186 = vst [vmem:[#allocation8] sm:$0xff] %v182_v35  ;;  %188 = vst [vmem:[#allocation8 + $0x10] sm:$0xff] %v184_v36 }
 0x141   :  { %375 = shalt.err (!%p372_p6)
}
 0x142   :  { %s376_s15 = scalar_lea.hbm %s468_s3, 512 }
 0x143   :  { %p377_p7 = scmp.ne.s32.totalorder %s468_s3, %s376_s15  ;;  %p380_p8 = scmp.lt.u32.totalorder %s376_s15, %s468_s3 }
 0x145   :  { %p382_p9 = pnand %p380_p8, %p377_p7 }
 0x147   :  { %385 = shalt.err (!%p382_p9)
}
 0x148   :  { %201 = dma.vmem_to_hbm [thread:$0]  %s196_s12, 512, %s468_s3, [#allocation5], %s393_s22, %s393_s22, %s394_s23  }
 0x149   :  { %390 = dma.done.wait [#allocation5], 512  }
 0x14a   :  { %391 = vsyncadd [#allocation5], 4294966784 }
 0x14b   :  { %205 = vsyncpa [#allocation4], 1 }
 0x14c   :  { %206 = vsyncpa [#allocation7], 1 }
 0x14d   :  { %207 = vsyncpa [#allocation5], 1 }

</bundles_post_ra>
